<compile_context>
chip_gen: v6e
topology: v6e:2x2x1
jax: 0.10.0
libtpu: 0.0.40
codegen_flags: <defaults>
</compile_context>

<pallas_src>
import functools

import jax
import jax.numpy as jnp
from jax.experimental import pallas as pl
from jax.experimental.pallas import tpu as pltpu


def _round_up(n, m):
    return (n + m - 1) // m * m


def _sublane(itemsize):
    # sublane packing multiple for a given element size (f32:8, bf16:16, int8:32)
    return max(8, 32 // int(itemsize))


# ----------------------------- kernels ------------------------------------ #

def _pw_kernel_bias(w_ref, b_ref, x_ref, o_ref, *, compute_dtype):
    # w_ref: (C_out, C_in)  b_ref: (C_out, 1)  x_ref: (C_in, tn)  o_ref: (C_out, tn)
    x = x_ref[...]
    if compute_dtype is not None and x.dtype != compute_dtype:
        x = x.astype(compute_dtype)          # in-kernel cast: no extra HBM pass
    prec = jax.lax.Precision.HIGHEST if x.dtype == jnp.float32 else None
    acc = jnp.dot(w_ref[...], x, preferred_element_type=jnp.float32, precision=prec)
    o_ref[...] = (acc + b_ref[...]).astype(o_ref.dtype)


def _pw_kernel_nobias(w_ref, x_ref, o_ref, *, compute_dtype):
    x = x_ref[...]
    if compute_dtype is not None and x.dtype != compute_dtype:
        x = x.astype(compute_dtype)
    prec = jax.lax.Precision.HIGHEST if x.dtype == jnp.float32 else None
    acc = jnp.dot(w_ref[...], x, preferred_element_type=jnp.float32, precision=prec)
    o_ref[...] = acc.astype(o_ref.dtype)


# --------------------------- planning helpers ------------------------------ #

def _vmem_plan(weight_bytes):
    """Generation-aware VMEM budgets. Returns (tile_budget, limit_cap, two_cores)."""
    try:
        phys = int(pltpu.get_tpu_info().vmem_capacity_bytes)
    except Exception:
        phys = 64 * 1024 * 1024           # conservative default
    if phys <= 80 * 1024 * 1024:          # v7x-class: 64 MiB / TC, 2 TCs per chip
        limit_cap = 48 * 1024 * 1024
        two_cores = True
    else:                                 # v5e / v6e: 128 MiB, single TC
        limit_cap = 96 * 1024 * 1024
        two_cores = False
    headroom = 4 * 1024 * 1024
    # Weight is counted twice: the pipeline double-buffers it even with a
    # constant index_map.  TODO(synk): pipeline_mode=pl.Buffered(1) on the
    # weight/bias specs would halve that once single-buffering is accepted.
    tile_budget = max(2 * 1024 * 1024, limit_cap - 2 * weight_bytes - headroom)
    return tile_budget, limit_cap, two_cores


def _choose_spatial_tile(hw, batch, c_in, c_out, in_itemsize, out_itemsize,
                         tile_budget, min_steps):
    """Pick the lane-axis tile tn (multiple of 128, or the full extent if tiny)."""
    if hw <= 128:
        return hw                         # block == full spatial extent (allowed)
    col_bytes = 2 * (_round_up(c_in, _sublane(in_itemsize)) * in_itemsize
                     + _round_up(c_out, _sublane(out_itemsize)) * out_itemsize)
    cap = max(128, (tile_budget // col_bytes) // 128 * 128)
    hw_full = _round_up(hw, 128)          # full-image tile (last block may be partial)
    cands = sorted({c for c in (hw_full, 16384, 8192, 4096, 2048, 1024, 512, 256, 128)
                    if 128 <= c <= min(cap, hw_full)}, reverse=True)
    if not cands:
        return 128
    # Largest tile that still yields enough parallel grid steps (v7x: 2 TCs).
    target = min(min_steps, batch * pl.cdiv(hw, 128))
    for c in cands:
        if batch * pl.cdiv(hw, c) >= target:
            return c
    return cands[-1]


# ------------------------------ pallas call --------------------------------- #

def _pointwise_conv_nchw(x3, w, b, tn, out_dtype, compute_dtype, vmem_limit_bytes):
    """x3: (B, C_in, HW); w: (C_out, C_in); b: (C_out, 1) | None. No padding needed."""
    B, C_in, HW = x3.shape
    C_out = w.shape[0]
    grid = (B, pl.cdiv(HW, tn))           # partial last spatial block is fine

    x_spec = pl.BlockSpec((None, C_in, tn), lambda bb, ss: (bb, 0, ss))
    o_spec = pl.BlockSpec((None, C_out, tn), lambda bb, ss: (bb, 0, ss))
    w_spec = pl.BlockSpec((C_out, C_in), lambda bb, ss: (0, 0))      # resident weight

    cp = pltpu.CompilerParams(
        dimension_semantics=("parallel", "parallel"),
        vmem_limit_bytes=int(vmem_limit_bytes),
    )
    out_shape = jax.ShapeDtypeStruct((B, C_out, HW), out_dtype)

    if b is not None:
        kern = functools.partial(_pw_kernel_bias, compute_dtype=compute_dtype)
        b_spec = pl.BlockSpec((C_out, 1), lambda bb, ss: (0, 0))
        return pl.pallas_call(
            kern,
            out_shape=out_shape,
            grid_spec=pltpu.PrefetchScalarGridSpec(
                num_scalar_prefetch=0,
                grid=grid,
                in_specs=[w_spec, b_spec, x_spec],
                out_specs=o_spec,
            ),
            compiler_params=cp,
        )(w, b, x3)

    kern = functools.partial(_pw_kernel_nobias, compute_dtype=compute_dtype)
    return pl.pallas_call(
        kern,
        out_shape=out_shape,
        grid_spec=pltpu.PrefetchScalarGridSpec(
            num_scalar_prefetch=0,
            grid=grid,
            in_specs=[w_spec, x_spec],
            out_specs=o_spec,
        ),
        compiler_params=cp,
    )(w, x3)


# ------------------------------ module ------------------------------------- #

class PointwiseConv2d:
    """JAX/Pallas equivalent of the PyTorch PointwiseConv2d (1x1 conv, NCHW)."""

    def __init__(self, in_channels, out_channels, stride=1, padding=0,
                 dilation=1, groups=1, bias=True, padding_mode="zeros",
                 key=None, dtype=jnp.float32, compute_dtype=None,
                 output_dtype=None):
        if groups != 1:
            # TODO(synk): grouped 1x1 conv (block-diagonal weight) not implemented.
            raise NotImplementedError("groups > 1 not supported")
        if padding_mode != "zeros":
            # TODO(synk): reflect/replicate/circular padding modes not implemented.
            raise NotImplementedError("padding_mode != 'zeros' not supported")
        del dilation  # no effect for a 1x1 kernel

        if isinstance(padding, str):
            pm = padding.lower()
            if pm in ("valid", "same"):
                padding = 0  # kernel_size=1 -> "same" needs no padding
            else:
                raise ValueError(f"unknown padding mode: {padding}")

        if key is None:
            key = jax.random.PRNGKey(0)
        kw, kb = jax.random.split(key)
        fan_in = in_channels  # kernel_size = 1x1
        bound = 1.0 / jnp.sqrt(fan_in)
        self.weight = jax.random.uniform(
            kw, (out_channels, in_channels), dtype=dtype, minval=-bound, maxval=bound)
        self.bias = (jax.random.uniform(
            kb, (out_channels,), dtype=dtype, minval=-bound, maxval=bound)
            if bias else None)

        self.in_channels = in_channels
        self.out_channels = out_channels
        self.stride = (stride, stride) if isinstance(stride, int) else tuple(stride)
        self.padding = (padding, padding) if isinstance(padding, int) else tuple(padding)
        self.compute_dtype = compute_dtype    # None -> compute in x.dtype
        self.output_dtype = output_dtype      # None -> x.dtype (bf16 halves out traffic)

    def __call__(self, x):
        """x: (B, C_in, H, W) NCHW -> (B, C_out, H_out, W_out) NCHW."""
        B, C_in, H, W = x.shape
        assert C_in == self.in_channels
        ph, pw_ = self.padding
        sh, sw = self.stride
        if ph or pw_:
            x = jnp.pad(x, ((0, 0), (0, 0), (ph, ph), (pw_, pw_)))
        if sh != 1 or sw != 1:
            # TODO(synk): fold the subsample into the kernel index_map / strided pl.ds
            # to avoid this extra strided HBM pass (stride path is rare glue).
            x = x[:, :, ::sh, ::sw]
        B, C_in, Ho, Wo = x.shape
        HW = Ho * Wo

        cdt = jnp.dtype(self.compute_dtype) if self.compute_dtype is not None else x.dtype
        out_dtype = jnp.dtype(self.output_dtype) if self.output_dtype is not None else x.dtype
        C_out = self.out_channels

        # Weight is tiny: cast it up-front; activations are cast (if needed) in-kernel.
        w = self.weight.astype(cdt)
        b = None if self.bias is None else self.bias.reshape(-1, 1).astype(jnp.float32)

        in_item = x.dtype.itemsize
        out_item = out_dtype.itemsize
        w_bytes = (_round_up(C_out, _sublane(w.dtype.itemsize))
                   * _round_up(C_in, 128) * w.dtype.itemsize)
        tile_budget, limit_cap, two_cores = _vmem_plan(w_bytes)
        tn = _choose_spatial_tile(HW, B, C_in, C_out, in_item, out_item,
                                  tile_budget, min_steps=8 if two_cores else 2)

        est = (2 * _round_up(C_in, _sublane(in_item)) * _round_up(tn, 128) * in_item
               + 2 * _round_up(C_out, _sublane(out_item)) * _round_up(tn, 128) * out_item
               + 2 * w_bytes + 4 * 1024 * 1024)
        vmem_limit = int(min(limit_cap, max(32 * 1024 * 1024, est)))

        # NCHW stays native: contiguous reshape only, no transpose, no padding.
        x3 = x.reshape(B, C_in, HW)
        out3 = _pointwise_conv_nchw(x3, w, b, tn, out_dtype, cdt, vmem_limit)
        return out3.reshape(B, C_out, Ho, Wo)


# ------------------------------- main -------------------------------------- #

if __name__ == "__main__":
    key = jax.random.PRNGKey(0)
    k_in, k_mod = jax.random.split(key)

    B, C_in, H, W = 2, 4, 16, 16
    C_out = 8
    x = jax.random.normal(k_in, (B, C_in, H, W), dtype=jnp.float32)

    # f32 compute path — tight check against a high-precision reference.
    mod = PointwiseConv2d(C_in, C_out, key=k_mod)
    y = jax.block_until_ready(mod(x))
    ref = jnp.einsum("oc,bchw->bohw", mod.weight, x,
                     precision=jax.lax.Precision.HIGHEST) \
        + mod.bias[None, :, None, None]
    assert y.shape == (B, C_out, H, W), y.shape
    assert jnp.allclose(y, ref, atol=1e-4, rtol=1e-4), float(jnp.max(jnp.abs(y - ref)))

    # bf16 compute path (in-kernel cast, native MXU dtype) — loose check.
    mod_bf16 = PointwiseConv2d(C_in, C_out, key=k_mod, compute_dtype=jnp.bfloat16)
    y_bf16 = jax.block_until_ready(mod_bf16(x))
    assert y_bf16.dtype == x.dtype
    assert jnp.allclose(y_bf16, ref, atol=1e-1, rtol=1e-1), \
        float(jnp.max(jnp.abs(y_bf16 - ref)))

    # bf16 output path (halved output HBM traffic) — loose check.
    mod_bf16o = PointwiseConv2d(C_in, C_out, key=k_mod,
                                compute_dtype=jnp.bfloat16, output_dtype=jnp.bfloat16)
    y_bf16o = jax.block_until_ready(mod_bf16o(x))
    assert y_bf16o.dtype == jnp.bfloat16
    assert jnp.allclose(y_bf16o.astype(jnp.float32), ref, atol=1e-1, rtol=1e-1), \
        float(jnp.max(jnp.abs(y_bf16o.astype(jnp.float32) - ref)))

    # stride / padding / no-bias glue path (odd spatial size -> partial lane block).
    mod_sp = PointwiseConv2d(C_in, C_out, stride=2, padding=1, bias=False, key=k_mod)
    y_sp = jax.block_until_ready(mod_sp(x))
    xp = jnp.pad(x, ((0, 0), (0, 0), (1, 1), (1, 1)))[:, :, ::2, ::2]
    ref_sp = jnp.einsum("oc,bchw->bohw", mod_sp.weight, xp,
                        precision=jax.lax.Precision.HIGHEST)
    assert y_sp.shape == ref_sp.shape, (y_sp.shape, ref_sp.shape)
    assert jnp.allclose(y_sp, ref_sp, atol=1e-4, rtol=1e-4), \
        float(jnp.max(jnp.abs(y_sp - ref_sp)))

    print("KERNEL_OK")
</pallas_src>

<mosaic_0001>
module attributes {stable_mosaic.version = 11 : i64} {
  func.func @_pw_kernel_bias(%arg0: i32, %arg1: i32, %arg2: memref<8x4xf32, #tpu.memory_space<vmem>>, %arg3: memref<8x1xf32, #tpu.memory_space<vmem>>, %arg4: memref<1x4x128xf32, #tpu.memory_space<vmem>>, %arg5: memref<1x8x128xf32, #tpu.memory_space<vmem>>) attributes {dimension_semantics = [#tpu.dimension_semantics<parallel>, #tpu.dimension_semantics<parallel>], iteration_bounds = array<i64: 2, 2>, scalar_prefetch = 0 : i64, scratch_operands = 0 : i64, tpu.core_type = #tpu.core_type<tc>, window_params = [{pipeline_mode = #tpu.pipeline_mode<synchronous>, transform_indices = @transform_0, window_bounds = array<i64: 8, 4>}, {pipeline_mode = #tpu.pipeline_mode<synchronous>, transform_indices = @transform_1, window_bounds = array<i64: 8, 1>}, {transform_indices = @transform_2, window_bounds = array<i64: 1, 4, 128>}, {transform_indices = @transform_3, window_bounds = array<i64: 1, 8, 128>}]} {
    %c0 = arith.constant 0 : index
    %c0_0 = arith.constant 0 : index
    %c0_1 = arith.constant 0 : index
    %0 = vector.load %arg4[%c0, %c0_0, %c0_1] : memref<1x4x128xf32, #tpu.memory_space<vmem>>, vector<1x4x128xf32>
    %1 = vector.shape_cast %0 : vector<1x4x128xf32> to vector<4x128xf32>
    %c0_2 = arith.constant 0 : index
    %c0_3 = arith.constant 0 : index
    %2 = vector.load %arg2[%c0_2, %c0_3] : memref<8x4xf32, #tpu.memory_space<vmem>>, vector<8x4xf32>
    %cst = arith.constant dense<0.000000e+00> : vector<8x128xf32>
    %3 = tpu.matmul %2, %1, %cst {dimension_numbers = #tpu.dot_dimension_numbers<[1], [0], [0], [1], [0, 0, 1, 1], [], []>, precision = #tpu.contract_precision<fp32>} : vector<8x4xf32>, vector<4x128xf32>, vector<8x128xf32> -> vector<8x128xf32>
    %c0_4 = arith.constant 0 : index
    %c0_5 = arith.constant 0 : index
    %4 = vector.load %arg3[%c0_4, %c0_5] : memref<8x1xf32, #tpu.memory_space<vmem>>, vector<8x1xf32>
    %5 = vector.broadcast %4 : vector<8x1xf32> to vector<8x128xf32>
    %6 = arith.addf %3, %5 : vector<8x128xf32>
    %c0_6 = arith.constant 0 : index
    %c0_7 = arith.constant 0 : index
    %c0_8 = arith.constant 0 : index
    %7 = vector.load %arg5[%c0_6, %c0_7, %c0_8] : memref<1x8x128xf32, #tpu.memory_space<vmem>>, vector<1x8x128xf32>
    %8 = vector.shape_cast %7 : vector<1x8x128xf32> to vector<8x128xf32>
    %9 = vector.shape_cast %6 : vector<8x128xf32> to vector<1x8x128xf32>
    tpu.vector_store %arg5[%c0_6, %c0_7, %c0_8], %9 {strides = array<i32>} : memref<1x8x128xf32, #tpu.memory_space<vmem>>, vector<1x8x128xf32>,
    return
  }
  func.func @transform_0(%arg0: i32, %arg1: i32) -> (i32, i32) {
    %c0_i32 = arith.constant 0 : i32
    %c0_i32_0 = arith.constant 0 : i32
    %c0_i32_1 = arith.constant 0 : i32
    return %c0_i32, %c0_i32_0 : i32, i32
  }
  func.func @transform_1(%arg0: i32, %arg1: i32) -> (i32, i32) {
    %c0_i32 = arith.constant 0 : i32
    %c0_i32_0 = arith.constant 0 : i32
    %c0_i32_1 = arith.constant 0 : i32
    return %c0_i32, %c0_i32_0 : i32, i32
  }
  func.func @transform_2(%arg0: i32, %arg1: i32) -> (i32, i32, i32) {
    %c0_i32 = arith.constant 0 : i32
    %c0_i32_0 = arith.constant 0 : i32
    return %arg0, %c0_i32, %arg1 : i32, i32, i32
  }
  func.func @transform_3(%arg0: i32, %arg1: i32) -> (i32, i32, i32) {
    %c0_i32 = arith.constant 0 : i32
    %c0_i32_0 = arith.constant 0 : i32
    return %arg0, %c0_i32, %arg1 : i32, i32, i32
  }
}

</mosaic_0001>

<bundles_post_ra>
// kernel: tpu_custom_call.1
= control target key start
LH: loop header
LB: loop body
LE: loop exit
PB: predicated region body
PF: predicated region fallthrough
CT: control target
= control target key end

     0   :  { %8 = vsyncpa [#allocation3], 0  ;;  %s1141_s0 = inlined_call_operand.vmem [shape: f32[8,4], index: 0, kind: input, shape index: {}]   ;;  %s1142_s1 = inlined_call_operand.vmem [shape: f32[8,1], index: 1, kind: input, shape index: {}]   ;;  %s1143_s2 = inlined_call_operand.vmem [shape: f32[2,4,256], index: 2, kind: input, shape index: {}]   ;;  %s1144_s3 = inlined_call_operand.hbm [shape: f32[2,8,256], index: 3, kind: output, shape index: {}]  }
   0x1   :  { %10 = vsyncpa [#allocation3 + $0x1], 0  ;;  %s999_s12 = smov 0   ;;  %s1001_s13 = smov 0  }
   0x2   :  { %s1003_s14 = smov 0   ;;  %s1005_s15 = smov 0  }
   0x3   :  { %s1007_s16 = smov 0   ;;  %s1009_s17 = smov 0  }
   0x4   :  { %s1011_s18 = smov 0   ;;  %s1013_s19 = smov 0  }
   0x5 LB: > { %s751_s20 = sadd.s32 4294967295, %s973_s19   ;;  %s752_s21 = sadd.s32 4294967294, %s973_s19   ;;  %s973_s19 = sphi %s1013_s19, %s16_s19   ;;  %s969_s18 = sphi %s1011_s18, %s1153_s18   ;;  %s965_s17 = sphi %s1009_s17, %s1152_s17   ;;  %s961_s16 = sphi %s1007_s16, %s1151_s16   ;;  %s957_s15 = sphi %s1005_s15, %s1150_s15   ;;  %s953_s14 = sphi %s1003_s14, %s1149_s14   ;;  %s949_s13 = sphi %s1001_s13, %s1148_s13   ;;  %s945_s12 = sphi %s999_s12, %s1147_s12  }
   0x6   : > { %s25_s22 = sadd.s32 1, %s965_s17  ;;  %s28_s23 = sadd.s32 1, %s969_s18 }
   0x7   : > { %p26_p0 = scmp.ge.s32.totalorder %s25_s22, 2  ;;  %p117_p1 = scmp.ne.s32.totalorder %s953_s14, %s949_s13 }
   0x8   : > { %p118_p2 = scmp.eq.s32.totalorder %s751_s20, 3  ;;  %p123_p5 = scmp.ne.s32.totalorder %s949_s13, %s945_s12 }
   0x9   : > { %s1155_s22 = smov (%p26_p0, %s25_s22), 0  ;;  %s1157_s23 = smov (!%p26_p0, %s28_s23), %s969_s18 }
   0xa   : > { %s103_s24 = ssub.s32 %s965_s17, %s1155_s22  ;;  %p1050_p3 = por %p118_p2, %p117_p1 }
   0xb   : > { %p30_p4 = scmp.ge.s32.totalorder %s1157_s23, 2  ;;  %p124_p6 = scmp.eq.s32.totalorder %s752_s21, 3 }
   0xc   : > { %p755_p7 = scmp.ge.s32.totalorder %s973_s19, 1  ;;  %p159_p9 = scmp.lt.s32.totalorder %s973_s19, 5 }
   0xd   : > { %s1159_s23 = smov (%p30_p4, %s1157_s23), 0  ;;  %p1059_p8 = por %p124_p6, %p123_p5 }
   0xe   : > { %s102_s27 = ssub.s32 %s969_s18, %s1159_s23  ;;  %s107_s28 = sadd.s32 1, %s953_s14 }
   0xf   : > { %s104_s29 = sor.u32 %s103_s24, %s102_s27  ;;  %p160_p10 = pnand %p755_p7, %p159_p9 }
  0x10   : > { %p105_p11 = scmp.eq.s32.totalorder %s104_s29, 0  ;;  %p186_p12 = scmp.lt.s32.totalorder (!%p160_p10), %s961_s16, 1 }
  0x11   : > { %163 = sbr.rel (%p160_p10) target bundleno = 257 (0x101), region = 32  ;;  %p188_p13 = scmp.lt.s32.totalorder (!%p160_p10), %s957_s15, 1 }
  0x12   : > { %s1068_s30 = scalar_select %p105_p11, %s953_s14, %s107_s28  }
  0x13   : > { %s183_s28 = sand.u32 (!%p160_p10), 1, %s949_s13   ;;  %s760_s4 = sshll.u32 (!%p160_p10), %s961_s16, 1 }
  0x14   : > { %s756_s29 = sshll.u32 (!%p160_p10), %s183_s28, 3  ;;  %s669_s5 = sadd.s32 (!%p160_p10), %s957_s15, %s760_s4 }
  0x15   : > { %s761_s6 = sshll.u32 (!%p160_p10), %s669_s5, 7  ;;  %s185_s7 = scalar_lea.vmem (!%p160_p10), [#allocation2], %s756_s29 }
  0x16   : > { %v195_v0 = vld [vmem:[%s1141_s0] sm:$0xff]  ;;  %v975_v1 = vmov 0.0   ;;  %vm976_vm0 = vmmov 0   ;;  %vm202_vm1 = vcmask 31744   ;;  %s187_s8 = scalar_select %p186_p12, %s961_s16, 1  ;;  %v977_v5 = vmov 0  }
  0x17   : > { %776 = vmatprep.subr.mxu0 %v975_v1  ;;  %778 = vmatprep.mubr.msk.f32.mxu0 %vm976_vm0, %v975_v1  ;;  %v196_v2 = vld [vmem:[%s1142_s1] sm:$0xff]  ;;  %v204_v3 = vsel %vm202_vm1, %v195_v0, 0  ;;  %s189_s9 = scalar_select %p188_p13, %s957_s15, 1  ;;  %vm206_vm2 = vcmask 1043456  }
  0x18   : > { %781 = vmatprep.subr.mxu1 %v975_v1  ;;  %783 = vmatprep.mubr.msk.f32.mxu1 %vm976_vm0, %v975_v1  ;;  %v276_v4 = vand.u32 4294901760, %v204_v3  ;;  %s757_s10 = sshll.u32 %s187_s8, 1  ;;  %s673_s8 = sshll.u32 %s185_s7, 4  ;;  %s674_s8 = int_to_ptr.vmem [resolvable:$true] %s673_s8 }
  0x19   : > { %880 = vset.pattern.permute.xlu0 %v977_v5  ;;  %s191_s11 = sadd.s32 %s757_s10, %s189_s9  ;;  %s1095_s16 = scalar_lea.hbm %s1144_s3, %s761_s6 }
  0x1a   : > { %199 = vperm.xlu0 %880, %v196_v2   ;;  %v277_v6 = vsub.f32 %v204_v3, %v276_v4  ;;  %s758_s20 = sshll.u32 %s191_s11, 2  ;;  %s658_s15 = scalar_lea.sflag [#allocation3], %s183_s28 }
  0x1b   : > { %s193_s27 = scalar_lea.vmem %s1143_s2, %s758_s20  ;;  %s881_s11 = scalar_lea.vmem %s674_s8, 128 }
  0x1c   : > { %v278_v7 = vand.u32 4294901760, %v277_v6  ;;  %v194_v8 = vld [vmem:[%s193_s27] sm:$0xf]  ;;  %p882_p0 = scmp.ne.s32.totalorder %s674_s8, %s881_s11  ;;  %s978_s20 = smov [#allocation2]  }
  0x1d   : > { %v208_v9 = vsel %vm206_vm2, %v194_v8, 0  ;;  %s885_s21 = sshll.u32 %s978_s20, 4  ;;  %s886_s21 = int_to_ptr.vmem [resolvable:$false] %s885_s21 }
  0x1e   : > { %v279_v10 = vsub.f32 %v277_v6, %v278_v7  ;;  %v241_v11 = vand.u32 4294901760, %v208_v9  ;;  %p883_p1 = pnand %p882_p0, %p1050_p3  ;;  %s887_s24 = scalar_lea.vmem %s886_s21, 256 }
  0x1f   : > { %p888_p4 = scmp.lt.s32.totalorder %s674_s8, %s886_s21  ;;  %p889_p5 = scmp.lt.s32.totalorder %s887_s24, %s881_s11 }
  0x20   : > { %v280_v12 = vand.u32 4294901760, %v279_v10  ;;  %777 = vmatpush3.msra.mxu0 %v241_v11  ;;  %v318_v13 = vsub.f32 %v208_v9, %v241_v11  ;;  %p884_p2 = pneg %p883_p1 }
  0x21   : > { %786 = vmatprep.subr.mxu0 %v975_v1  ;;  %p890_p6 = por %p889_p5, %p888_p4 }
  0x22   : > { %779 = vmatmul.mubr.f32.vlgmr.msra.gmra.mxu0 %v280_v12  ;;  %v319_v14 = vand.u32 4294901760, %v318_v13 }
  0x23   : > { %787 = vmatpush3.msra.mxu0 %v318_v13  ;;  %788 = vmatprep.mubr.msk.f32.mxu0 %vm976_vm0, %v975_v1  ;;  %p891_p7 = pnand %p890_p6, %p884_p2 }
  0x24   : > { %796 = vmatprep.subr.mxu0 %v975_v1  ;;  %v320_v15 = vsub.f32 %v318_v13, %v319_v14 }
  0x26   : > { %789 = vmatmul.mubr.f32.vlgmr.msra.gmra.mxu0 %v277_v6  ;;  %v321_v16 = vand.u32 4294901760, %v320_v15 }
  0x27   : > { %797 = vmatpush3.msra.mxu0 %v319_v14  ;;  %798 = vmatprep.mubr.msk.f32.mxu0 %vm976_vm0, %v975_v1 }
  0x28   : > { %782 = vmatpush3.msra.mxu1 %v321_v16 }
  0x29   : > { %784 = vmatmul.mubr.f32.vlgmr.msra.gmra.mxu1 %v276_v4  ;;  %791 = vmatprep.subr.mxu1 %v975_v1 }
  0x2a   : > { %792 = vmatpush3.msra.mxu1 %v241_v11  ;;  %793 = vmatprep.mubr.msk.f32.mxu1 %vm976_vm0, %v975_v1 }
  0x2b   : > { %801 = vmatprep.subr.mxu1 %v975_v1  ;;  %799 = vmatmul.mubr.f32.vlgmr.msra.gmra.mxu0 %v276_v4 }
  0x2d   : > { %794 = vmatmul.mubr.f32.vlgmr.msra.gmra.mxu1 %v278_v7 }
  0x2e   : > { %802 = vmatpush3.msra.mxu1 %v241_v11  ;;  %803 = vmatprep.mubr.msk.f32.mxu1 %vm976_vm0, %v975_v1 }
  0x31   : > { %804 = vmatmul.mubr.f32.vlgmr.msra.gmra.mxu1 %v276_v4 }
  0x95   : > { %v200_v18 = vpop.permute.xlu0 %199 }
  0xe2   : > { %v282_v17 = vpop.f32.mrf.mxu0 }
  0xe3   : > { %v283_v21 = vadd.f32 %v282_v17, %v200_v18 }
  0xe4   : > { %v780_v19 = vpop.f32.mrf.mxu0 }
  0xe6   : > { %v432_v20 = vpop.f32.mrf.mxu0 }
  0xe8   : > { %v790_v22 = vpop.f32.mrf.mxu0 }
  0xe9   : > { %v358_v23 = vpop.f32.mrf.mxu1 }
  0xea   : > { %v359_v24 = vadd.f32 %v358_v23, %v283_v21 }
  0xeb   : > { %v785_v25 = vpop.f32.mrf.mxu1  ;;  %v580_v26 = vpop.f32.mrf.mxu0 }
  0xec   : > { %v433_v27 = vadd.f32 %v432_v20, %v359_v24 }
  0xed   : > { %v506_v28 = vpop.f32.mrf.mxu1  ;;  %v800_v29 = vpop.f32.mrf.mxu0 }
  0xee   : > { %v507_v30 = vadd.f32 %v506_v28, %v433_v27 }
  0xef   : > { %v795_v31 = vpop.f32.mrf.mxu1 }
  0xf0   : > { %v581_v32 = vadd.f32 %v580_v26, %v507_v30 }
  0xf1   : > { %v652_v33 = vpop.f32.mrf.mxu1 }
  0xf2   : > { %v653_v34 = vadd.f32 %v652_v33, %v581_v32 }
  0xf3   : > { %v805_v35 = vpop.f32.mrf.mxu1 }
  0xf4   : > { %656 = vst [vmem:[%s185_s7] sm:$0xff] %v653_v34 }
  0xf5   : > { %894 = shalt.err (!%p891_p7)
}
  0xf6   : > { %s895_s27 = scalar_lea.hbm %s1095_s16, 128  ;;  %s899_s4 = scalar_lea.hbm %s1144_s3, 512 }
  0xf7   : > { %p896_p9 = scmp.ne.s32.totalorder %s1095_s16, %s895_s27  ;;  %p900_p12 = scmp.lt.s32.totalorder %s1095_s16, %s1144_s3 }
  0xf8   : > { %p901_p13 = scmp.lt.s32.totalorder %s899_s4, %s895_s27 }
  0xf9   : > { %p897_p10 = pnand %p896_p9, %p1050_p3 }
  0xfa   : > { %p902_p0 = por %p901_p13, %p900_p12 }
  0xfb   : > { %p898_p11 = pneg %p897_p10 }
  0xfd   : > { %p903_p1 = pnand %p902_p0, %p898_p11 }
  0xff   : > { %906 = shalt.err (!%p903_p1)
}
 0x100   : > { %806 = dma.vmem_to_hbm [thread:$0]  (%p1050_p3), %s674_s8, 128, %s1095_s16, %s658_s15  }
 0x101 PF: > { %p812_p2 = scmp.ge.s32.totalorder %s973_s19, 2  ;;  %s685_s7 = sand.u32 1, %s945_s12  }
 0x102   : > { %s686_s9 = scalar_lea.sflag [#allocation3], %s685_s7 }
 0x103   : > { %p809_p4 = pnand %p812_p2, %p1059_p8 }
 0x105   : > { %p810_p5 = pneg %p809_p4 }
 0x107   : > { %940 = dma.done.wait (%p810_p5), %s686_s9, 128  }
 0x108   : > { %942 = vsyncadd (%p810_p5), %s686_s9, 4294967168  ;;  %s16_s19 = sadd.s32 1, %s973_s19   ;;  %s1147_s12 = smov %s949_s13 }
 0x109   : > { %p13_p6 = scmp.ge.s32.totalorder %s16_s19, 6   ;;  %s1148_s13 = smov %s953_s14 }
 0x10a   : > { %s1149_s14 = smov %s1068_s30  ;;  %s1150_s15 = smov %s965_s17 }
 0x10b   : > { %s1151_s16 = smov %s969_s18  ;;  %s1152_s17 = smov %s1155_s22 }
 0x10c   : > { %s1153_s18 = smov %s1159_s23  ;;  %15 = sbr.rel (!%p13_p6) target bundleno = 5 (0x5), region = 67 }
 0x111   :  { %691 = vsyncpa [#allocation3], 1 }
 0x112   :  { %693 = vsyncpa [#allocation3 + $0x1], 1 }

</bundles_post_ra>
